<compile_context>
chip_gen: v6e
topology: v6e:2x2x1
jax: 0.10.0
libtpu: 0.0.40
codegen_flags: <defaults>
</compile_context>

<pallas_src>
import jax
import jax.numpy as jnp
from jax.experimental import pallas as pl
from jax.experimental.pallas import tpu as pltpu


# ---------------------------------------------------------------------------
# helpers
# ---------------------------------------------------------------------------
def _round_up(x, m):
    return ((x + m - 1) // m) * m


def _pick_tile(dim_p, cap=512):
    """Largest multiple of 128 <= cap that divides dim_p (dim_p is a 128-multiple)."""
    t = max(128, (min(cap, dim_p) // 128) * 128)
    while dim_p % t:
        t -= 128
    return t


def _pick_tm(m):
    return 512 if m >= 512 else _round_up(m, 8)


_VMEM_LIMIT = 32 * 1024 * 1024  # explicit; tiles below stay well under this
_COMPILER_PARAMS = pltpu.CompilerParams(
    dimension_semantics=("parallel", "parallel", "arbitrary"),
    vmem_limit_bytes=_VMEM_LIMIT,
)


# ---------------------------------------------------------------------------
# Pallas kernels
# ---------------------------------------------------------------------------
def _matmul_kernel(x_ref, wT_ref, o_ref, acc_ref):
    """o = x @ wT (alpha already folded into wT). Grid = (M, N, K), K last."""
    @pl.when(pl.program_id(2) == 0)
    def _():
        acc_ref[...] = jnp.zeros_like(acc_ref)

    acc_ref[...] += jnp.dot(x_ref[...], wT_ref[...],
                            preferred_element_type=jnp.float32)

    @pl.when(pl.program_id(2) == pl.num_programs(2) - 1)
    def _():
        o_ref[...] = acc_ref[...].astype(o_ref.dtype)


def _lowrank_kernel(x_ref, aT_ref, bT_ref, o_ref, h_ref):
    """o = (x @ aT) @ bT (alpha folded into bT). Grid = (M, N, K), K last.

    h (tm, rank_p) is accumulated over K; the second (tiny-K) matmul runs
    once per (M, N) tile at the final K step. rank is zero-padded to 128 so
    both matmuls use dense, lane-full MXU tiles.
    """
    k = pl.program_id(2)

    @pl.when(k == 0)
    def _():
        h_ref[...] = jnp.zeros_like(h_ref)

    h_ref[...] += jnp.dot(x_ref[...], aT_ref[...],
                          preferred_element_type=jnp.float32)

    @pl.when(k == pl.num_programs(2) - 1)
    def _():
        y = jnp.dot(h_ref[...], bT_ref[...].astype(jnp.float32),
                    preferred_element_type=jnp.float32)
        o_ref[...] = y.astype(o_ref.dtype)


# ---------------------------------------------------------------------------
# pallas_call wrappers (operate on 2-D activation slabs)
# ---------------------------------------------------------------------------
def dense_matmul_2d(x2d, wT_p, cout):
    """x2d @ wT_p (weight pre-transposed/padded/alpha-folded), sliced to cout."""
    m, cin = x2d.shape
    cin_p, cout_p = wT_p.shape
    tm = _pick_tm(m)
    m_p = _round_up(m, tm)
    tk = _pick_tile(cin_p)
    tn = _pick_tile(cout_p)

    xp = x2d
    if m_p != m or cin_p != cin:
        xp = jnp.pad(x2d, ((0, m_p - m), (0, cin_p - cin)))

    out = pl.pallas_call(
        _matmul_kernel,
        out_shape=jax.ShapeDtypeStruct((m_p, cout_p), x2d.dtype),
        grid_spec=pltpu.PrefetchScalarGridSpec(
            num_scalar_prefetch=0,
            grid=(m_p // tm, cout_p // tn, cin_p // tk),
            in_specs=[
                pl.BlockSpec((tm, tk), lambda i, j, k: (i, k)),
                pl.BlockSpec((tk, tn), lambda i, j, k: (k, j)),
            ],
            out_specs=pl.BlockSpec((tm, tn), lambda i, j, k: (i, j)),
            scratch_shapes=[pltpu.VMEM((tm, tn), jnp.float32)],
        ),
        compiler_params=_COMPILER_PARAMS,
    )(xp, wT_p)
    return out[:m, :cout]


def lowrank_matmul_2d(x2d, aT_p, bT_p, cout):
    """(x2d @ aT_p) @ bT_p (weights pre-transposed/padded, alpha in bT_p)."""
    m, cin = x2d.shape
    cin_p, rank_p = aT_p.shape
    _, cout_p = bT_p.shape
    tm = _pick_tm(m)
    m_p = _round_up(m, tm)
    tk = _pick_tile(cin_p)
    tn = _pick_tile(cout_p, cap=1024)  # big N tile limits redundant x re-reads

    xp = x2d
    if m_p != m or cin_p != cin:
        xp = jnp.pad(x2d, ((0, m_p - m), (0, cin_p - cin)))

    out = pl.pallas_call(
        _lowrank_kernel,
        out_shape=jax.ShapeDtypeStruct((m_p, cout_p), x2d.dtype),
        grid_spec=pltpu.PrefetchScalarGridSpec(
            num_scalar_prefetch=0,
            grid=(m_p // tm, cout_p // tn, cin_p // tk),
            in_specs=[
                pl.BlockSpec((tm, tk), lambda i, j, k: (i, k)),
                pl.BlockSpec((tk, rank_p), lambda i, j, k: (k, 0)),
                pl.BlockSpec((rank_p, tn), lambda i, j, k: (0, j)),
            ],
            out_specs=pl.BlockSpec((tm, tn), lambda i, j, k: (i, j)),
            scratch_shapes=[pltpu.VMEM((tm, rank_p), jnp.float32)],
        ),
        compiler_params=_COMPILER_PARAMS,
    )(xp, aT_p, bT_p)
    return out[:m, :cout]


# ---------------------------------------------------------------------------
# Module wrapper (glue in plain JAX)
# ---------------------------------------------------------------------------
class LowRankBranch:
    # Use the fused x @ (alpha*B@A)^T single-matmul whenever the dense weight
    # is small enough that the extra FLOPs are free (the op is HBM-bound on
    # x / y anyway). Two-stage kernel kept for genuinely large cin*cout.
    _FUSE_MAX_WEIGHT_ELEMS = 1 << 18  # 256K elements

    def __init__(self, in_features, out_features, rank, alpha=1.0, weight=None,
                 key=None):
        self.in_features = in_features
        self.out_features = out_features
        self.rank = rank
        self.alpha = float(alpha)
        if key is None:
            key = jax.random.PRNGKey(0)

        if rank == 0:
            self.a_weight = None
            self.b_weight = None
        elif rank < 0:
            # nn.Linear(in, out): weight shape (out, in). Deterministic non-zero
            # init so the demo is non-trivial (torch default zero-inits it).
            self.a_weight = 0.02 * jax.random.normal(
                key, (out_features, in_features), jnp.float32)
            self.b_weight = None
        else:
            ka, kb = jax.random.split(key)
            self.a_weight = 0.1 * jax.random.normal(
                ka, (rank, in_features), jnp.float32)
            self.b_weight = 0.1 * jax.random.normal(
                kb, (out_features, rank), jnp.float32)

        if weight is not None:
            self._reset_from_weight(weight)
        self._prepare()

    # --- init-time prep (plain JAX, runs once) ------------------------------
    def _reset_from_weight(self, weight):
        # Mirrors torch reset_parameters(weight): rank<0 copies, rank>0 uses SVD.
        # TODO(synk): torch uses float64 SVD; JAX default is f32 (enable x64 for parity).
        w = jnp.asarray(weight, jnp.float32).reshape(weight.shape[0], -1)
        assert w.shape == (self.out_features, self.in_features)
        if self.rank < 0:
            self.a_weight = w
        elif self.rank > 0:
            u, s, vh = jnp.linalg.svd(w, full_matrices=False)
            self.a_weight = vh[: self.rank]
            self.b_weight = u[:, : self.rank] * s[: self.rank]

    def _prepare(self):
        """Store pre-transposed, zero-padded, alpha-folded weights."""
        if self.rank == 0:
            return
        cin, cout = self.in_features, self.out_features
        cin_p = _round_up(cin, 128)
        cout_p = _round_up(cout, 128)

        if self.rank < 0:
            wT = self.alpha * self.a_weight.T                     # (cin, cout)
            self._wT_p = jnp.pad(wT, ((0, cin_p - cin), (0, cout_p - cout)))
            self._fused = True
            return

        if cin * cout <= self._FUSE_MAX_WEIGHT_ELEMS:
            # W_eff^T = alpha * A^T @ B^T  (exactly x @ W_eff^T == alpha*(x A^T) B^T)
            wT = self.alpha * (self.a_weight.T @ self.b_weight.T)  # (cin, cout)
            self._wT_p = jnp.pad(wT, ((0, cin_p - cin), (0, cout_p - cout)))
            self._fused = True
        else:
            rank_p = _round_up(self.rank, 128)
            aT = self.a_weight.T                                   # (cin, rank)
            bT = self.alpha * self.b_weight.T                      # (rank, cout)
            self._aT_p = jnp.pad(aT, ((0, cin_p - cin), (0, rank_p - self.rank)))
            self._bT_p = jnp.pad(bT, ((0, rank_p - self.rank), (0, cout_p - cout)))
            self._fused = False

    # --- torch-equivalent API -----------------------------------------------
    def get_effective_weight(self):
        if self.rank == 0:
            return None
        if self.rank < 0:
            return self.a_weight
        return self.b_weight @ self.a_weight

    def _forward_2d(self, x2d):
        if self._fused:
            return dense_matmul_2d(x2d, self._wT_p, self.out_features)
        return lowrank_matmul_2d(x2d, self._aT_p, self._bT_p, self.out_features)

    def __call__(self, x):
        if self.rank == 0:
            return None

        if x.ndim <= 3:
            lead = x.shape[:-1]
            x2d = x.reshape(-1, x.shape[-1])
            y2d = self._forward_2d(x2d)
            return y2d.reshape(*lead, self.out_features)

        assert x.ndim == 4
        assert x.shape[1] == self.in_features
        B, C, H, W = x.shape
        # NCHW -> NHWC layout plumbing stays in XLA.
        # TODO(synk): keep the surrounding model NHWC end-to-end to drop these
        #             two full-tensor HBM transposes (dominant cost at small C).
        x2d = jnp.transpose(x, (0, 2, 3, 1)).reshape(B * H * W, C)
        y2d = self._forward_2d(x2d)
        y = y2d.reshape(B, H, W, self.out_features)
        return jnp.transpose(y, (0, 3, 1, 2))  # back to NCHW

    # TODO(synk): as_hook() depends on deepcompressor hook/packager classes; out of scope.


# ---------------------------------------------------------------------------
# Demo / correctness check
# ---------------------------------------------------------------------------
if __name__ == "__main__":
    key = jax.random.PRNGKey(0)
    kx, kp, kx2, kp2, kx3, kp3 = jax.random.split(key, 6)

    # 1) rank > 0, 4-D NCHW path (small dims -> fused single-matmul kernel)
    B, C_in, H, W = 2, 4, 16, 16
    C_out, rank, alpha = 8, 2, 1.5
    x = jax.random.normal(kx, (B, C_in, H, W), jnp.float32)
    branch = LowRankBranch(C_in, C_out, rank, alpha=alpha, key=kp)
    y = jax.block_until_ready(branch(x))
    assert y.shape == (B, C_out, H, W), y.shape
    x_nhwc = jnp.transpose(x, (0, 2, 3, 1)).reshape(B * H * W, C_in)
    ref2d = alpha * (x_nhwc @ branch.a_weight.T) @ branch.b_weight.T
    ref = jnp.transpose(ref2d.reshape(B, H, W, C_out), (0, 3, 1, 2))
    assert jnp.allclose(y, ref, atol=1e-4, rtol=1e-4)

    # also exercise the <=3D path of the same branch
    x3d = jax.random.normal(kx, (2, 8, C_in), jnp.float32)
    y3d = jax.block_until_ready(branch(x3d))
    ref3d = alpha * (x3d @ branch.a_weight.T) @ branch.b_weight.T
    assert jnp.allclose(y3d, ref3d, atol=1e-4, rtol=1e-4)

    # 2) rank < 0 path (dense tiled matmul kernel)
    lin = LowRankBranch(32, 8, rank=-1, alpha=0.75, key=kp2)
    xl = jax.random.normal(kx2, (2, 8, 32), jnp.float32)
    yl = jax.block_until_ready(lin(xl))
    refl = 0.75 * (xl @ lin.a_weight.T)
    assert jnp.allclose(yl, refl, atol=1e-4, rtol=1e-4)

    # 3) rank > 0 with large cin*cout -> two-stage low-rank kernel (K-tiled)
    big = LowRankBranch(1024, 1024, rank=32, alpha=1.25, key=kp3)
    assert not big._fused
    xb = jax.random.normal(kx3, (4, 8, 1024), jnp.float32)
    yb = jax.block_until_ready(big(xb))
    refb = 1.25 * (xb @ big.a_weight.T) @ big.b_weight.T
    assert jnp.allclose(yb, refb, atol=1e-3, rtol=1e-3)

    # 4) rank == 0 returns None
    assert LowRankBranch(4, 8, 0)(x) is None

    print("KERNEL_OK")
</pallas_src>

<mosaic_0001>
module attributes {stable_mosaic.version = 11 : i64} {
  func.func @_matmul_kernel(%arg0: i32, %arg1: i32, %arg2: i32, %arg3: memref<512x128xf32, #tpu.memory_space<vmem>>, %arg4: memref<128x128xf32, #tpu.memory_space<vmem>>, %arg5: memref<512x128xf32, #tpu.memory_space<vmem>>, %arg6: memref<512x128xf32, #tpu.memory_space<vmem>>) attributes {dimension_semantics = [#tpu.dimension_semantics<parallel>, #tpu.dimension_semantics<parallel>, #tpu.dimension_semantics<arbitrary>], iteration_bounds = array<i64: 1, 1, 1>, scalar_prefetch = 0 : i64, scratch_operands = 1 : i64, tpu.core_type = #tpu.core_type<tc>, window_params = [{transform_indices = @transform_0, window_bounds = array<i64: 512, 128>}, {transform_indices = @transform_1, window_bounds = array<i64: 128, 128>}, {transform_indices = @transform_2, window_bounds = array<i64: 512, 128>}]} {
    %c0_i32 = arith.constant 0 : i32
    %0 = arith.cmpi eq, %arg2, %c0_i32 : i32
    %1 = arith.extui %0 : i1 to i32
    %c0_i32_0 = arith.constant 0 : i32
    %2 = arith.cmpi ne, %1, %c0_i32_0 : i32
    scf.if %2 {
      %cst_10 = arith.constant 0.000000e+00 : f32
      %12 = vector.broadcast %cst_10 : f32 to vector<512x128xf32>
      %c0_11 = arith.constant 0 : index
      %c0_12 = arith.constant 0 : index
      %13 = vector.load %arg6[%c0_11, %c0_12] : memref<512x128xf32, #tpu.memory_space<vmem>>, vector<512x128xf32>
      tpu.vector_store %arg6[%c0_11, %c0_12], %12 {strides = array<i32>} : memref<512x128xf32, #tpu.memory_space<vmem>>, vector<512x128xf32>,
    } else {
    }
    %c0 = arith.constant 0 : index
    %c0_1 = arith.constant 0 : index
    %3 = vector.load %arg6[%c0, %c0_1] : memref<512x128xf32, #tpu.memory_space<vmem>>, vector<512x128xf32>
    %c0_2 = arith.constant 0 : index
    %c0_3 = arith.constant 0 : index
    %4 = vector.load %arg3[%c0_2, %c0_3] : memref<512x128xf32, #tpu.memory_space<vmem>>, vector<512x128xf32>
    %c0_4 = arith.constant 0 : index
    %c0_5 = arith.constant 0 : index
    %5 = vector.load %arg4[%c0_4, %c0_5] : memref<128x128xf32, #tpu.memory_space<vmem>>, vector<128x128xf32>
    %cst = arith.constant dense<0.000000e+00> : vector<512x128xf32>
    %6 = tpu.matmul %4, %5, %cst {dimension_numbers = #tpu.dot_dimension_numbers<[1], [0], [0], [1], [0, 0, 1, 1], [], []>} : vector<512x128xf32>, vector<128x128xf32>, vector<512x128xf32> -> vector<512x128xf32>
    %7 = arith.addf %3, %6 : vector<512x128xf32>
    %c0_6 = arith.constant 0 : index
    %c0_7 = arith.constant 0 : index
    %8 = vector.load %arg6[%c0_6, %c0_7] : memref<512x128xf32, #tpu.memory_space<vmem>>, vector<512x128xf32>
    tpu.vector_store %arg6[%c0_6, %c0_7], %7 {strides = array<i32>} : memref<512x128xf32, #tpu.memory_space<vmem>>, vector<512x128xf32>,
    %c0_i32_8 = arith.constant 0 : i32
    %9 = arith.cmpi eq, %arg2, %c0_i32_8 : i32
    %10 = arith.extui %9 : i1 to i32
    %c0_i32_9 = arith.constant 0 : i32
    %11 = arith.cmpi ne, %10, %c0_i32_9 : i32
    scf.if %11 {
      %c0_10 = arith.constant 0 : index
      %c0_11 = arith.constant 0 : index
      %12 = vector.load %arg6[%c0_10, %c0_11] : memref<512x128xf32, #tpu.memory_space<vmem>>, vector<512x128xf32>
      %c0_12 = arith.constant 0 : index
      %c0_13 = arith.constant 0 : index
      %13 = vector.load %arg5[%c0_12, %c0_13] : memref<512x128xf32, #tpu.memory_space<vmem>>, vector<512x128xf32>
      tpu.vector_store %arg5[%c0_12, %c0_13], %12 {strides = array<i32>} : memref<512x128xf32, #tpu.memory_space<vmem>>, vector<512x128xf32>,
    } else {
    }
    return
  }
  func.func @transform_0(%arg0: i32, %arg1: i32, %arg2: i32) -> (i32, i32) {
    %c0_i32 = arith.constant 0 : i32
    return %arg0, %arg2 : i32, i32
  }
  func.func @transform_1(%arg0: i32, %arg1: i32, %arg2: i32) -> (i32, i32) {
    %c0_i32 = arith.constant 0 : i32
    return %arg2, %arg1 : i32, i32
  }
  func.func @transform_2(%arg0: i32, %arg1: i32, %arg2: i32) -> (i32, i32) {
    %c0_i32 = arith.constant 0 : i32
    return %arg0, %arg1 : i32, i32
  }
}

</mosaic_0001>

<bundles_post_ra>
// kernel: tpu_custom_call.1
= control target key start
LH: loop header
LB: loop body
LE: loop exit
PB: predicated region body
PF: predicated region fallthrough
CT: control target
= control target key end

     0   :  { %7 = vsyncpa [#allocation4], 0  ;;  %s1263_s0 = inlined_call_operand.hbm [shape: f32[512,128], index: 0, kind: input, shape index: {}]   ;;  %s1264_s1 = inlined_call_operand.hbm [shape: f32[128,128], index: 1, kind: input, shape index: {}]   ;;  %s1265_s2 = inlined_call_operand.hbm [shape: f32[512,128], index: 2, kind: output, shape index: {}]  }
   0x1   :  { %8 = vsyncpa [#allocation7], 0 }
   0x2   :  { %9 = vsyncpa [#allocation5], 0  ;;  %s1225_s9 = smov [#allocation3]  }
   0x3   :  { %s15_s10 = sshll.u32 %s1225_s9, 4  ;;  %s16_s10 = int_to_ptr.vmem [resolvable:$true] %s15_s10 }
   0x4   :  { %s1167_s11 = scalar_lea.vmem %s16_s10, 8192  ;;  %p1172_p1 = scmp.lt.s32.totalorder %s16_s10, %s16_s10 }
   0x5   :  { %p1168_p0 = scmp.ne.s32.totalorder %s16_s10, %s1167_s11  ;;  %p1173_p2 = scmp.lt.s32.totalorder %s1167_s11, %s1167_s11 }
   0x7   :  { %p1174_p3 = por %p1173_p2, %p1172_p1 }
   0x9   :  { %p1175_p4 = pnand %p1174_p3, %p1168_p0 }
   0xb   :  { %1178 = shalt.err (!%p1175_p4)
}
   0xc   :  { %s1226_s12 = smov 128   ;;  %s1227_s13 = smov 8  }
   0xd   :  { %21 = dma.hbm_to_vmem [thread:$0]  %s1263_s0, 8192, %s16_s10, [#allocation4], %s1226_s12, %s1226_s12, %s1227_s13  }
   0xe   :  { %s1228_s16 = smov [#allocation6]  }
   0xf   :  { %s27_s17 = sshll.u32 %s1228_s16, 4  ;;  %s28_s17 = int_to_ptr.vmem [resolvable:$true] %s27_s17 }
  0x10   :  { %s1187_s18 = scalar_lea.vmem %s28_s17, 2048  ;;  %p1192_p6 = scmp.lt.s32.totalorder %s28_s17, %s28_s17 }
  0x11   :  { %p1188_p5 = scmp.ne.s32.totalorder %s28_s17, %s1187_s18  ;;  %p1193_p7 = scmp.lt.s32.totalorder %s1187_s18, %s1187_s18 }
  0x13   :  { %p1194_p8 = por %p1193_p7, %p1192_p6 }
  0x15   :  { %p1195_p9 = pnand %p1194_p8, %p1188_p5 }
  0x17   :  { %1198 = shalt.err (!%p1195_p9)
}
  0x18   :  { %33 = dma.hbm_to_vmem [thread:$0]  %s1264_s1, 2048, %s28_s17, [#allocation7], %s1226_s12, %s1226_s12, %s1227_s13  }
  0x19   :  { %1219 = dma.done.wait [#allocation4], 8192  }
  0x1a   :  { %1220 = vsyncadd [#allocation4], 4294959104 }
  0x1b   :  { %1221 = dma.done.wait [#allocation7], 2048  }
  0x1c   :  { %1222 = vsyncadd [#allocation7], 4294965248  ;;  %v251_v0 = vld [vmem:[#allocation6 + $0x78] sm:$0xff]  ;;  %v250_v1 = vld [vmem:[#allocation6 + $0x70] sm:$0xff]  ;;  %s1229_s0 = smov [#allocation8]  }
  0x1d   :  { %994 = vmatprep.subr.mxu0 %v251_v0  ;;  %1122 = vmatprep.subr.mxu1 %v251_v0  ;;  %v249_v2 = vld [vmem:[#allocation6 + $0x68] sm:$0xff]  ;;  %v248_v3 = vld [vmem:[#allocation6 + $0x60] sm:$0xff]  ;;  %v247_v4 = vld [vmem:[#allocation6 + $0x58] sm:$0xff]  ;;  %s901_s1 = sshll.u32 %s1229_s0, 4  ;;  %s902_s1 = int_to_ptr.vmem [resolvable:$true] %s901_s1 }
  0x1e   :  { %995 = vmatpush3.msra.mxu0 %v251_v0  ;;  %1138 = vmatpush3.msra.mxu1 %v251_v0  ;;  %v246_v5 = vld [vmem:[#allocation6 + $0x50] sm:$0xff]  ;;  %v245_v6 = vld [vmem:[#allocation6 + $0x48] sm:$0xff]  ;;  %v244_v7 = vld [vmem:[#allocation6 + $0x40] sm:$0xff]  ;;  %s1199_s21 = scalar_lea.vmem %s902_s1, 8192  ;;  %p1204_p11 = scmp.lt.s32.totalorder %s902_s1, %s902_s1 }
  0x1f   :  { %996 = vmatprep.subr.mxu0 %v250_v1  ;;  %1123 = vmatprep.subr.mxu1 %v250_v1  ;;  %v243_v8 = vld [vmem:[#allocation6 + $0x38] sm:$0xff]  ;;  %v242_v9 = vld [vmem:[#allocation6 + $0x30] sm:$0xff]  ;;  %v241_v10 = vld [vmem:[#allocation6 + $0x28] sm:$0xff]  ;;  %p1200_p10 = scmp.ne.s32.totalorder %s902_s1, %s1199_s21  ;;  %p1205_p12 = scmp.lt.s32.totalorder %s1199_s21, %s1199_s21 }
  0x20   :  { %997 = vmatpush3.msra.mxu0 %v250_v1  ;;  %1139 = vmatpush3.msra.mxu1 %v250_v1  ;;  %v240_v11 = vld [vmem:[#allocation6 + $0x20] sm:$0xff]  ;;  %v239_v12 = vld [vmem:[#allocation6 + $0x18] sm:$0xff]  ;;  %v238_v13 = vld [vmem:[#allocation6 + $0x10] sm:$0xff] }
  0x21   :  { %998 = vmatprep.subr.mxu0 %v249_v2  ;;  %1124 = vmatprep.subr.mxu1 %v249_v2  ;;  %v237_v14 = vld [vmem:[#allocation6 + $0x8] sm:$0xff]  ;;  %v236_v15 = vld [vmem:[#allocation6] sm:$0xff]  ;;  %v174_v20 = vld [vmem:[#allocation3 + $0x10] sm:$0xff]  ;;  %p1206_p13 = por %p1205_p12, %p1204_p11 }
  0x22   :  { %999 = vmatpush3.msra.mxu0 %v249_v2  ;;  %1140 = vmatpush3.msra.mxu1 %v249_v2  ;;  %v172_v16 = vld [vmem:[#allocation3] sm:$0xff]  ;;  %v173_v18 = vld [vmem:[#allocation3 + $0x8] sm:$0xff]  ;;  %v206_v21 = vld [vmem:[#allocation3 + $0x110] sm:$0xff] }
  0x23   :  { %1000 = vmatprep.subr.mxu0 %v248_v3  ;;  %1125 = vmatprep.subr.mxu1 %v248_v3  ;;  %v204_v17 = vld [vmem:[#allocation3 + $0x100] sm:$0xff]  ;;  %v205_v19 = vld [vmem:[#allocation3 + $0x108] sm:$0xff]  ;;  %v175_v22 = vld [vmem:[#allocation3 + $0x18] sm:$0xff]  ;;  %p1207_p0 = pnand %p1206_p13, %p1200_p10 }
  0x24   :  { %1001 = vmatpush3.msra.mxu0 %v248_v3  ;;  %1141 = vmatpush3.msra.mxu1 %v248_v3  ;;  %v207_v23 = vld [vmem:[#allocation3 + $0x118] sm:$0xff]  ;;  %v176_v24 = vld [vmem:[#allocation3 + $0x20] sm:$0xff]  ;;  %v177_v26 = vld [vmem:[#allocation3 + $0x28] sm:$0xff] }
  0x25   :  { %1002 = vmatprep.subr.mxu0 %v247_v4  ;;  %1126 = vmatprep.subr.mxu1 %v247_v4  ;;  %v208_v25 = vld [vmem:[#allocation3 + $0x120] sm:$0xff]  ;;  %v209_v27 = vld [vmem:[#allocation3 + $0x128] sm:$0xff]  ;;  %v178_v28 = vld [vmem:[#allocation3 + $0x30] sm:$0xff] }
  0x26   :  { %1003 = vmatpush3.msra.mxu0 %v247_v4  ;;  %1142 = vmatpush3.msra.mxu1 %v247_v4  ;;  %v210_v29 = vld [vmem:[#allocation3 + $0x130] sm:$0xff]  ;;  %v179_v30 = vld [vmem:[#allocation3 + $0x38] sm:$0xff]  ;;  %v180_v32 = vld [vmem:[#allocation3 + $0x40] sm:$0xff] }
  0x27   :  { %1004 = vmatprep.subr.mxu0 %v246_v5  ;;  %1127 = vmatprep.subr.mxu1 %v246_v5  ;;  %v211_v31 = vld [vmem:[#allocation3 + $0x138] sm:$0xff]  ;;  %v212_v33 = vld [vmem:[#allocation3 + $0x140] sm:$0xff]  ;;  %v181_v34 = vld [vmem:[#allocation3 + $0x48] sm:$0xff] }
  0x28   :  { %1005 = vmatpush3.msra.mxu0 %v246_v5  ;;  %1143 = vmatpush3.msra.mxu1 %v246_v5  ;;  %v213_v35 = vld [vmem:[#allocation3 + $0x148] sm:$0xff]  ;;  %v182_v36 = vld [vmem:[#allocation3 + $0x50] sm:$0xff]  ;;  %v183_v38 = vld [vmem:[#allocation3 + $0x58] sm:$0xff] }
  0x29   :  { %1006 = vmatprep.subr.mxu0 %v245_v6  ;;  %1128 = vmatprep.subr.mxu1 %v245_v6  ;;  %v214_v37 = vld [vmem:[#allocation3 + $0x150] sm:$0xff]  ;;  %v215_v39 = vld [vmem:[#allocation3 + $0x158] sm:$0xff]  ;;  %v184_v40 = vld [vmem:[#allocation3 + $0x60] sm:$0xff] }
  0x2a   :  { %1007 = vmatpush3.msra.mxu0 %v245_v6  ;;  %1144 = vmatpush3.msra.mxu1 %v245_v6  ;;  %v216_v41 = vld [vmem:[#allocation3 + $0x160] sm:$0xff]  ;;  %v185_v42 = vld [vmem:[#allocation3 + $0x68] sm:$0xff]  ;;  %v186_v44 = vld [vmem:[#allocation3 + $0x70] sm:$0xff] }
  0x2b   :  { %1008 = vmatprep.subr.mxu0 %v244_v7  ;;  %1129 = vmatprep.subr.mxu1 %v244_v7  ;;  %v217_v43 = vld [vmem:[#allocation3 + $0x168] sm:$0xff]  ;;  %v218_v45 = vld [vmem:[#allocation3 + $0x170] sm:$0xff]  ;;  %v187_v46 = vld [vmem:[#allocation3 + $0x78] sm:$0xff] }
  0x2c   :  { %1009 = vmatpush3.msra.mxu0 %v244_v7  ;;  %1145 = vmatpush3.msra.mxu1 %v244_v7  ;;  %v219_v47 = vld [vmem:[#allocation3 + $0x178] sm:$0xff]  ;;  %v188_v48 = vld [vmem:[#allocation3 + $0x80] sm:$0xff]  ;;  %v189_v50 = vld [vmem:[#allocation3 + $0x88] sm:$0xff] }
  0x2d   :  { %1010 = vmatprep.subr.mxu0 %v243_v8  ;;  %1130 = vmatprep.subr.mxu1 %v243_v8  ;;  %v220_v49 = vld [vmem:[#allocation3 + $0x180] sm:$0xff]  ;;  %v221_v51 = vld [vmem:[#allocation3 + $0x188] sm:$0xff]  ;;  %v190_v52 = vld [vmem:[#allocation3 + $0x90] sm:$0xff] }
  0x2e   :  { %1011 = vmatpush3.msra.mxu0 %v243_v8  ;;  %1146 = vmatpush3.msra.mxu1 %v243_v8  ;;  %v222_v53 = vld [vmem:[#allocation3 + $0x190] sm:$0xff]  ;;  %v191_v54 = vld [vmem:[#allocation3 + $0x98] sm:$0xff]  ;;  %v192_v56 = vld [vmem:[#allocation3 + $0xa0] sm:$0xff] }
  0x2f   :  { %1012 = vmatprep.subr.mxu0 %v242_v9  ;;  %1131 = vmatprep.subr.mxu1 %v242_v9  ;;  %v223_v55 = vld [vmem:[#allocation3 + $0x198] sm:$0xff]  ;;  %v224_v57 = vld [vmem:[#allocation3 + $0x1a0] sm:$0xff]  ;;  %v193_v58 = vld [vmem:[#allocation3 + $0xa8] sm:$0xff] }
  0x30   :  { %1013 = vmatpush3.msra.mxu0 %v242_v9  ;;  %1147 = vmatpush3.msra.mxu1 %v242_v9  ;;  %v225_v59 = vld [vmem:[#allocation3 + $0x1a8] sm:$0xff]  ;;  %v194_v60 = vld [vmem:[#allocation3 + $0xb0] sm:$0xff]  ;;  %v195_v62 = vld [vmem:[#allocation3 + $0xb8] sm:$0xff] }
  0x31   :  { %1014 = vmatprep.subr.mxu0 %v241_v10  ;;  %1132 = vmatprep.subr.mxu1 %v241_v10  ;;  %v226_v61 = vld [vmem:[#allocation3 + $0x1b0] sm:$0xff]  ;;  %v227_v63 = vld [vmem:[#allocation3 + $0x1b8] sm:$0xff]  ;;  %v196_v0 = vld [vmem:[#allocation3 + $0xc0] sm:$0xff] }
  0x32   :  { %1015 = vmatpush3.msra.mxu0 %v241_v10  ;;  %1148 = vmatpush3.msra.mxu1 %v241_v10  ;;  %v228_v1 = vld [vmem:[#allocation3 + $0x1c0] sm:$0xff]  ;;  %v197_v2 = vld [vmem:[#allocation3 + $0xc8] sm:$0xff]  ;;  %v198_v4 = vld [vmem:[#allocation3 + $0xd0] sm:$0xff] }
  0x33   :  { %1016 = vmatprep.subr.mxu0 %v240_v11  ;;  %1133 = vmatprep.subr.mxu1 %v240_v11  ;;  %v229_v3 = vld [vmem:[#allocation3 + $0x1c8] sm:$0xff]  ;;  %v230_v5 = vld [vmem:[#allocation3 + $0x1d0] sm:$0xff]  ;;  %v199_v6 = vld [vmem:[#allocation3 + $0xd8] sm:$0xff] }
  0x34   :  { %1017 = vmatpush3.msra.mxu0 %v240_v11  ;;  %1149 = vmatpush3.msra.mxu1 %v240_v11  ;;  %v231_v7 = vld [vmem:[#allocation3 + $0x1d8] sm:$0xff]  ;;  %v200_v8 = vld [vmem:[#allocation3 + $0xe0] sm:$0xff]  ;;  %v201_v10 = vld [vmem:[#allocation3 + $0xe8] sm:$0xff] }
  0x35   :  { %1018 = vmatprep.subr.mxu0 %v239_v12  ;;  %1134 = vmatprep.subr.mxu1 %v239_v12  ;;  %v232_v9 = vld [vmem:[#allocation3 + $0x1e0] sm:$0xff]  ;;  %v233_v11 = vld [vmem:[#allocation3 + $0x1e8] sm:$0xff] }
  0x36   :  { %1019 = vmatpush3.msra.mxu0 %v239_v12  ;;  %1150 = vmatpush3.msra.mxu1 %v239_v12  ;;  %v202_v12 = vld [vmem:[#allocation3 + $0xf0] sm:$0xff] }
  0x37   :  { %1020 = vmatprep.subr.mxu0 %v238_v13  ;;  %1135 = vmatprep.subr.mxu1 %v238_v13 }
  0x38   :  { %1021 = vmatpush3.msra.mxu0 %v238_v13  ;;  %1151 = vmatpush3.msra.mxu1 %v238_v13  ;;  %v234_v13 = vld [vmem:[#allocation3 + $0x1f0] sm:$0xff] }
  0x39   :  { %1022 = vmatprep.subr.mxu0 %v237_v14  ;;  %1136 = vmatprep.subr.mxu1 %v237_v14 }
  0x3a   :  { %1023 = vmatpush3.msra.mxu0 %v237_v14  ;;  %1152 = vmatpush3.msra.mxu1 %v237_v14  ;;  %v203_v14 = vld [vmem:[#allocation3 + $0xf8] sm:$0xff] }
  0x3b   :  { %1024 = vmatprep.subr.mxu0 %v236_v15  ;;  %1137 = vmatprep.subr.mxu1 %v236_v15 }
  0x3c   :  { %1025 = vmatpush3.msra.mxu0 %v236_v15  ;;  %1153 = vmatpush3.msra.mxu1 %v236_v15  ;;  %v235_v15 = vld [vmem:[#allocation3 + $0x1f8] sm:$0xff] }
  0x3d   :  { %1026 = vmatprep.mubr.f32.mxu0 %v172_v16  ;;  %1074 = vmatprep.mubr.f32.mxu1 %v204_v17 }
  0x3e   :  { %1027 = vmatmul.mubr.f32.vlgmr.msra.gmra.mxu0 %v173_v18  ;;  %1075 = vmatmul.mubr.f32.vlgmr.msra.gmra.mxu1 %v205_v19 }
  0x3f   :  { %1029 = vmatprep.mubr.f32.mxu0 %v174_v20  ;;  %1077 = vmatprep.mubr.f32.mxu1 %v206_v21 }
  0x42   :  { %1030 = vmatmul.mubr.f32.gmra.mxu0 %v175_v22  ;;  %1078 = vmatmul.mubr.f32.gmra.mxu1 %v207_v23 }
  0x43   :  { %1032 = vmatprep.mubr.f32.mxu0 %v176_v24  ;;  %1080 = vmatprep.mubr.f32.mxu1 %v208_v25 }
  0x46   :  { %1033 = vmatmul.mubr.f32.gmra.mxu0 %v177_v26  ;;  %1081 = vmatmul.mubr.f32.gmra.mxu1 %v209_v27 }
  0x47   :  { %1035 = vmatprep.mubr.f32.mxu0 %v178_v28  ;;  %1083 = vmatprep.mubr.f32.mxu1 %v210_v29 }
  0x4a   :  { %1036 = vmatmul.mubr.f32.gmra.mxu0 %v179_v30  ;;  %1084 = vmatmul.mubr.f32.gmra.mxu1 %v211_v31 }
  0x4b   :  { %1038 = vmatprep.mubr.f32.mxu0 %v180_v32  ;;  %1086 = vmatprep.mubr.f32.mxu1 %v212_v33 }
  0x4e   :  { %1039 = vmatmul.mubr.f32.gmra.mxu0 %v181_v34  ;;  %1087 = vmatmul.mubr.f32.gmra.mxu1 %v213_v35 }
  0x4f   :  { %1041 = vmatprep.mubr.f32.mxu0 %v182_v36  ;;  %1089 = vmatprep.mubr.f32.mxu1 %v214_v37 }
  0x52   :  { %1042 = vmatmul.mubr.f32.gmra.mxu0 %v183_v38  ;;  %1090 = vmatmul.mubr.f32.gmra.mxu1 %v215_v39 }
  0x53   :  { %1044 = vmatprep.mubr.f32.mxu0 %v184_v40  ;;  %1092 = vmatprep.mubr.f32.mxu1 %v216_v41 }
  0x56   :  { %1045 = vmatmul.mubr.f32.gmra.mxu0 %v185_v42  ;;  %1093 = vmatmul.mubr.f32.gmra.mxu1 %v217_v43 }
  0x57   :  { %1047 = vmatprep.mubr.f32.mxu0 %v186_v44  ;;  %1095 = vmatprep.mubr.f32.mxu1 %v218_v45 }
  0x5a   :  { %1048 = vmatmul.mubr.f32.gmra.mxu0 %v187_v46  ;;  %1096 = vmatmul.mubr.f32.gmra.mxu1 %v219_v47 }
  0x5b   :  { %1050 = vmatprep.mubr.f32.mxu0 %v188_v48  ;;  %1098 = vmatprep.mubr.f32.mxu1 %v220_v49 }
  0x5e   :  { %1051 = vmatmul.mubr.f32.gmra.mxu0 %v189_v50  ;;  %1099 = vmatmul.mubr.f32.gmra.mxu1 %v221_v51 }
  0x5f   :  { %1053 = vmatprep.mubr.f32.mxu0 %v190_v52  ;;  %1101 = vmatprep.mubr.f32.mxu1 %v222_v53 }
  0x62   :  { %1054 = vmatmul.mubr.f32.gmra.mxu0 %v191_v54  ;;  %1102 = vmatmul.mubr.f32.gmra.mxu1 %v223_v55 }
  0x63   :  { %1056 = vmatprep.mubr.f32.mxu0 %v192_v56  ;;  %1104 = vmatprep.mubr.f32.mxu1 %v224_v57 }
  0x66   :  { %1057 = vmatmul.mubr.f32.gmra.mxu0 %v193_v58  ;;  %1105 = vmatmul.mubr.f32.gmra.mxu1 %v225_v59 }
  0x67   :  { %1059 = vmatprep.mubr.f32.mxu0 %v194_v60  ;;  %1107 = vmatprep.mubr.f32.mxu1 %v226_v61 }
  0x6a   :  { %1060 = vmatmul.mubr.f32.gmra.mxu0 %v195_v62  ;;  %1108 = vmatmul.mubr.f32.gmra.mxu1 %v227_v63 }
  0x6b   :  { %1062 = vmatprep.mubr.f32.mxu0 %v196_v0  ;;  %1110 = vmatprep.mubr.f32.mxu1 %v228_v1 }
  0x6e   :  { %1063 = vmatmul.mubr.f32.gmra.mxu0 %v197_v2  ;;  %1111 = vmatmul.mubr.f32.gmra.mxu1 %v229_v3 }
  0x6f   :  { %1065 = vmatprep.mubr.f32.mxu0 %v198_v4  ;;  %1113 = vmatprep.mubr.f32.mxu1 %v230_v5 }
  0x72   :  { %1066 = vmatmul.mubr.f32.gmra.mxu0 %v199_v6  ;;  %1114 = vmatmul.mubr.f32.gmra.mxu1 %v231_v7 }
  0x73   :  { %1068 = vmatprep.mubr.f32.mxu0 %v200_v8  ;;  %1116 = vmatprep.mubr.f32.mxu1 %v232_v9 }
  0x76   :  { %1069 = vmatmul.mubr.f32.gmra.mxu0 %v201_v10  ;;  %1117 = vmatmul.mubr.f32.gmra.mxu1 %v233_v11 }
  0x77   :  { %1071 = vmatprep.mubr.f32.mxu0 %v202_v12  ;;  %1119 = vmatprep.mubr.f32.mxu1 %v234_v13 }
  0x7a   :  { %1072 = vmatmul.mubr.f32.gmra.mxu0 %v203_v14  ;;  %1120 = vmatmul.mubr.f32.gmra.mxu1 %v235_v15 }
  0xfe   :  { %v1028_v16 = vpop.f32.mrf.mxu0  ;;  %v1076_v17 = vpop.f32.mrf.mxu1 }
  0xff   :  { %833 = vst [vmem:[#allocation8 + $0x8] sm:$0xff] %v1028_v16  ;;  %865 = vst [vmem:[#allocation8 + $0x108] sm:$0xff] %v1076_v17 }
 0x100   :  { %v318_v18 = vpop.f32.mrf.mxu0  ;;  %v478_v19 = vpop.f32.mrf.mxu1 }
 0x101   :  { %832 = vst [vmem:[#allocation8] sm:$0xff] %v318_v18  ;;  %864 = vst [vmem:[#allocation8 + $0x100] sm:$0xff] %v478_v19 }
 0x102   :  { %v1031_v20 = vpop.f32.mrf.mxu0  ;;  %v1079_v21 = vpop.f32.mrf.mxu1 }
 0x103   :  { %835 = vst [vmem:[#allocation8 + $0x18] sm:$0xff] %v1031_v20  ;;  %867 = vst [vmem:[#allocation8 + $0x118] sm:$0xff] %v1079_v21 }
 0x104   :  { %v328_v22 = vpop.f32.mrf.mxu0  ;;  %v488_v23 = vpop.f32.mrf.mxu1 }
 0x105   :  { %834 = vst [vmem:[#allocation8 + $0x10] sm:$0xff] %v328_v22  ;;  %866 = vst [vmem:[#allocation8 + $0x110] sm:$0xff] %v488_v23 }
 0x106   :  { %v1034_v24 = vpop.f32.mrf.mxu0  ;;  %v1082_v25 = vpop.f32.mrf.mxu1 }
 0x107   :  { %837 = vst [vmem:[#allocation8 + $0x28] sm:$0xff] %v1034_v24  ;;  %869 = vst [vmem:[#allocation8 + $0x128] sm:$0xff] %v1082_v25 }
 0x108   :  { %v338_v26 = vpop.f32.mrf.mxu0  ;;  %v498_v27 = vpop.f32.mrf.mxu1 }
 0x109   :  { %836 = vst [vmem:[#allocation8 + $0x20] sm:$0xff] %v338_v26  ;;  %868 = vst [vmem:[#allocation8 + $0x120] sm:$0xff] %v498_v27 }
 0x10a   :  { %v1037_v28 = vpop.f32.mrf.mxu0  ;;  %v1085_v29 = vpop.f32.mrf.mxu1 }
 0x10b   :  { %839 = vst [vmem:[#allocation8 + $0x38] sm:$0xff] %v1037_v28  ;;  %871 = vst [vmem:[#allocation8 + $0x138] sm:$0xff] %v1085_v29 }
 0x10c   :  { %v348_v30 = vpop.f32.mrf.mxu0  ;;  %v508_v31 = vpop.f32.mrf.mxu1 }
 0x10d   :  { %838 = vst [vmem:[#allocation8 + $0x30] sm:$0xff] %v348_v30  ;;  %870 = vst [vmem:[#allocation8 + $0x130] sm:$0xff] %v508_v31 }
 0x10e   :  { %v1040_v32 = vpop.f32.mrf.mxu0  ;;  %v1088_v33 = vpop.f32.mrf.mxu1 }
 0x10f   :  { %841 = vst [vmem:[#allocation8 + $0x48] sm:$0xff] %v1040_v32  ;;  %873 = vst [vmem:[#allocation8 + $0x148] sm:$0xff] %v1088_v33 }
 0x110   :  { %v358_v34 = vpop.f32.mrf.mxu0  ;;  %v518_v35 = vpop.f32.mrf.mxu1 }
 0x111   :  { %840 = vst [vmem:[#allocation8 + $0x40] sm:$0xff] %v358_v34  ;;  %872 = vst [vmem:[#allocation8 + $0x140] sm:$0xff] %v518_v35 }
 0x112   :  { %v1043_v36 = vpop.f32.mrf.mxu0  ;;  %v1091_v37 = vpop.f32.mrf.mxu1 }
 0x113   :  { %843 = vst [vmem:[#allocation8 + $0x58] sm:$0xff] %v1043_v36  ;;  %875 = vst [vmem:[#allocation8 + $0x158] sm:$0xff] %v1091_v37 }
 0x114   :  { %v368_v38 = vpop.f32.mrf.mxu0  ;;  %v528_v39 = vpop.f32.mrf.mxu1 }
 0x115   :  { %842 = vst [vmem:[#allocation8 + $0x50] sm:$0xff] %v368_v38  ;;  %874 = vst [vmem:[#allocation8 + $0x150] sm:$0xff] %v528_v39 }
 0x116   :  { %v1046_v40 = vpop.f32.mrf.mxu0  ;;  %v1094_v41 = vpop.f32.mrf.mxu1 }
 0x117   :  { %845 = vst [vmem:[#allocation8 + $0x68] sm:$0xff] %v1046_v40  ;;  %877 = vst [vmem:[#allocation8 + $0x168] sm:$0xff] %v1094_v41 }
 0x118   :  { %v378_v42 = vpop.f32.mrf.mxu0  ;;  %v538_v43 = vpop.f32.mrf.mxu1 }
 0x119   :  { %844 = vst [vmem:[#allocation8 + $0x60] sm:$0xff] %v378_v42  ;;  %876 = vst [vmem:[#allocation8 + $0x160] sm:$0xff] %v538_v43 }
 0x11a   :  { %v1049_v44 = vpop.f32.mrf.mxu0  ;;  %v1097_v45 = vpop.f32.mrf.mxu1 }
 0x11b   :  { %847 = vst [vmem:[#allocation8 + $0x78] sm:$0xff] %v1049_v44  ;;  %879 = vst [vmem:[#allocation8 + $0x178] sm:$0xff] %v1097_v45 }
 0x11c   :  { %v388_v46 = vpop.f32.mrf.mxu0  ;;  %v548_v47 = vpop.f32.mrf.mxu1 }
 0x11d   :  { %846 = vst [vmem:[#allocation8 + $0x70] sm:$0xff] %v388_v46  ;;  %878 = vst [vmem:[#allocation8 + $0x170] sm:$0xff] %v548_v47 }
 0x11e   :  { %v1052_v48 = vpop.f32.mrf.mxu0  ;;  %v1100_v49 = vpop.f32.mrf.mxu1 }
 0x11f   :  { %849 = vst [vmem:[#allocation8 + $0x88] sm:$0xff] %v1052_v48  ;;  %881 = vst [vmem:[#allocation8 + $0x188] sm:$0xff] %v1100_v49 }
 0x120   :  { %v398_v50 = vpop.f32.mrf.mxu0  ;;  %v558_v51 = vpop.f32.mrf.mxu1 }
 0x121   :  { %848 = vst [vmem:[#allocation8 + $0x80] sm:$0xff] %v398_v50  ;;  %880 = vst [vmem:[#allocation8 + $0x180] sm:$0xff] %v558_v51 }
 0x122   :  { %v1055_v52 = vpop.f32.mrf.mxu0  ;;  %v1103_v53 = vpop.f32.mrf.mxu1 }
 0x123   :  { %851 = vst [vmem:[#allocation8 + $0x98] sm:$0xff] %v1055_v52  ;;  %883 = vst [vmem:[#allocation8 + $0x198] sm:$0xff] %v1103_v53 }
 0x124   :  { %v408_v54 = vpop.f32.mrf.mxu0  ;;  %v568_v55 = vpop.f32.mrf.mxu1 }
 0x125   :  { %850 = vst [vmem:[#allocation8 + $0x90] sm:$0xff] %v408_v54  ;;  %882 = vst [vmem:[#allocation8 + $0x190] sm:$0xff] %v568_v55 }
 0x126   :  { %v1058_v56 = vpop.f32.mrf.mxu0  ;;  %v1106_v57 = vpop.f32.mrf.mxu1 }
 0x127   :  { %853 = vst [vmem:[#allocation8 + $0xa8] sm:$0xff] %v1058_v56  ;;  %885 = vst [vmem:[#allocation8 + $0x1a8] sm:$0xff] %v1106_v57 }
 0x128   :  { %v418_v58 = vpop.f32.mrf.mxu0  ;;  %v578_v59 = vpop.f32.mrf.mxu1 }
 0x129   :  { %852 = vst [vmem:[#allocation8 + $0xa0] sm:$0xff] %v418_v58  ;;  %884 = vst [vmem:[#allocation8 + $0x1a0] sm:$0xff] %v578_v59 }
 0x12a   :  { %v1061_v60 = vpop.f32.mrf.mxu0  ;;  %v1109_v61 = vpop.f32.mrf.mxu1 }
 0x12b   :  { %855 = vst [vmem:[#allocation8 + $0xb8] sm:$0xff] %v1061_v60  ;;  %887 = vst [vmem:[#allocation8 + $0x1b8] sm:$0xff] %v1109_v61 }
 0x12c   :  { %v428_v62 = vpop.f32.mrf.mxu0  ;;  %v588_v63 = vpop.f32.mrf.mxu1 }
 0x12d   :  { %854 = vst [vmem:[#allocation8 + $0xb0] sm:$0xff] %v428_v62  ;;  %886 = vst [vmem:[#allocation8 + $0x1b0] sm:$0xff] %v588_v63 }
 0x12e   :  { %v1064_v0 = vpop.f32.mrf.mxu0  ;;  %v1112_v1 = vpop.f32.mrf.mxu1 }
 0x12f   :  { %857 = vst [vmem:[#allocation8 + $0xc8] sm:$0xff] %v1064_v0  ;;  %889 = vst [vmem:[#allocation8 + $0x1c8] sm:$0xff] %v1112_v1 }
 0x130   :  { %v438_v2 = vpop.f32.mrf.mxu0  ;;  %v598_v3 = vpop.f32.mrf.mxu1 }
 0x131   :  { %856 = vst [vmem:[#allocation8 + $0xc0] sm:$0xff] %v438_v2  ;;  %888 = vst [vmem:[#allocation8 + $0x1c0] sm:$0xff] %v598_v3 }
 0x132   :  { %v1067_v4 = vpop.f32.mrf.mxu0  ;;  %v1115_v5 = vpop.f32.mrf.mxu1 }
 0x133   :  { %859 = vst [vmem:[#allocation8 + $0xd8] sm:$0xff] %v1067_v4  ;;  %891 = vst [vmem:[#allocation8 + $0x1d8] sm:$0xff] %v1115_v5 }
 0x134   :  { %v448_v6 = vpop.f32.mrf.mxu0  ;;  %v608_v7 = vpop.f32.mrf.mxu1 }
 0x135   :  { %858 = vst [vmem:[#allocation8 + $0xd0] sm:$0xff] %v448_v6  ;;  %890 = vst [vmem:[#allocation8 + $0x1d0] sm:$0xff] %v608_v7 }
 0x136   :  { %v1070_v8 = vpop.f32.mrf.mxu0  ;;  %v1118_v9 = vpop.f32.mrf.mxu1 }
 0x137   :  { %861 = vst [vmem:[#allocation8 + $0xe8] sm:$0xff] %v1070_v8  ;;  %893 = vst [vmem:[#allocation8 + $0x1e8] sm:$0xff] %v1118_v9 }
 0x138   :  { %v458_v10 = vpop.f32.mrf.mxu0  ;;  %v618_v11 = vpop.f32.mrf.mxu1 }
 0x139   :  { %860 = vst [vmem:[#allocation8 + $0xe0] sm:$0xff] %v458_v10  ;;  %892 = vst [vmem:[#allocation8 + $0x1e0] sm:$0xff] %v618_v11 }
 0x13a   :  { %v1073_v12 = vpop.f32.mrf.mxu0  ;;  %v1121_v13 = vpop.f32.mrf.mxu1 }
 0x13b   :  { %863 = vst [vmem:[#allocation8 + $0xf8] sm:$0xff] %v1073_v12  ;;  %895 = vst [vmem:[#allocation8 + $0x1f8] sm:$0xff] %v1121_v13 }
 0x13c   :  { %v468_v14 = vpop.f32.mrf.mxu0  ;;  %v628_v15 = vpop.f32.mrf.mxu1 }
 0x13d   :  { %862 = vst [vmem:[#allocation8 + $0xf0] sm:$0xff] %v468_v14  ;;  %894 = vst [vmem:[#allocation8 + $0x1f0] sm:$0xff] %v628_v15 }
 0x13e   :  { %1210 = shalt.err (!%p1207_p0)
}
 0x13f   :  { %907 = dma.vmem_to_hbm [thread:$0]  %s902_s1, 8192, %s1265_s2, [#allocation5], %s1226_s12, %s1226_s12, %s1227_s13  }
 0x140   :  { %1223 = dma.done.wait [#allocation5], 8192  }
 0x141   :  { %1224 = vsyncadd [#allocation5], 4294959104 }
 0x142   :  { %911 = vsyncpa [#allocation4], 1 }
 0x143   :  { %912 = vsyncpa [#allocation7], 1 }
 0x144   :  { %913 = vsyncpa [#allocation5], 1 }

</bundles_post_ra>
